<compile_context>
chip_gen: v5e
topology: v5e:2x2
jax: 0.10.0
libtpu: 0.0.40
codegen_flags: <defaults>
</compile_context>

<pallas_src>
import functools

import jax
import jax.numpy as jnp
from jax import lax
from jax.experimental import pallas as pl
from jax.experimental.pallas import tpu as pltpu


def _dwsep_kernel(x_ref, wdw_ref, bdw_ref, wpw_ref, bpw_ref, o_ref,
                  yfull_ref, ydense_ref, *,
                  KH, KW, Wp, H_OUT, W_OUT, C_IN, STRIDE, DIL, L):
    # x_ref:      (1, C_IN, Hp*Wp)          VMEM, padded input, flat spatial on lanes
    # wdw_ref:    (C_IN, KH*KW)             VMEM, depthwise weights
    # bdw_ref:    (C_IN, 1)                 VMEM
    # wpw_ref:    (C_OUT, C_IN)             VMEM, pointwise weights
    # bpw_ref:    (C_OUT, 1)                VMEM
    # o_ref:      (1, C_OUT, H_OUT*W_OUT)   VMEM, lane-dense output block
    # yfull_ref:  (C_IN, L)                 VMEM scratch, stride-1 dw output (+ garbage cols)
    # ydense_ref: (C_IN, H_OUT*W_OUT)       VMEM scratch, compacted dw output

    # ---- depthwise conv: all channels at once, one ref-sliced load + FMA per tap ----
    acc = None
    for kh in range(KH):
        for kw in range(KW):
            t = kh * KW + kw
            shift = (kh * Wp + kw) * DIL
            patch = x_ref[0, :, pl.ds(shift, L)]        # (C_IN, L) offset vector load
            w_col = wdw_ref[:, t:t + 1]                 # (C_IN, 1) per-channel tap weight
            term = patch * w_col                        # lane-broadcast FMA, all channels
            acc = term if acc is None else acc + term
    y = jnp.maximum(acc + bdw_ref[...], 0.0)            # dw bias + ReLU, (C_IN, L)
    yfull_ref[...] = y                                  # one dense store

    # ---- compact valid columns into a lane-dense (C_IN, H_OUT*W_OUT) slab ----
    for ho in range(H_OUT):
        if STRIDE == 1:
            chunk = yfull_ref[:, pl.ds(ho * Wp, W_OUT)]
        else:
            # TODO(synk): stride > 1 decimation path is untested by the self-test.
            chunk = yfull_ref[:, pl.ds(ho * STRIDE * Wp, W_OUT, stride=STRIDE)]
        ydense_ref[:, pl.ds(ho * W_OUT, W_OUT)] = chunk

    # ---- pointwise 1x1 conv + bias + ReLU on the VPU (channels too small for MXU) ----
    z = None
    for ci in range(C_IN):
        row = ydense_ref[ci:ci + 1, :]                  # (1, HW) ref-sliced row
        col = wpw_ref[:, ci:ci + 1]                     # (C_OUT, 1) weight column
        term = row * col                                # (C_OUT, HW) dense FMA
        z = term if z is None else z + term
    z = jnp.maximum(z + bpw_ref[...], 0.0)              # pw bias + ReLU
    o_ref[0] = z.astype(o_ref.dtype)                    # full-lane-width store


def depthwise_separable_conv(x_nchw, w_dw, b_dw, w_pw, b_pw,
                             *, stride=1, padding=0, dilation=1):
    """x_nchw: (N, C_in, H, W); w_dw: (C_in, 1, KH, KW); w_pw: (C_out, C_in, 1, 1)."""
    N, C_IN, H, W = x_nchw.shape
    KH, KW = w_dw.shape[2], w_dw.shape[3]
    C_OUT = w_pw.shape[0]
    H_OUT = (H + 2 * padding - dilation * (KH - 1) - 1) // stride + 1
    W_OUT = (W + 2 * padding - dilation * (KW - 1) - 1) // stride + 1

    # Single zero-pad pass in NCHW; the flatten to (N, C, Hp*Wp) is free (contiguous).
    if padding > 0:
        x_pad = jnp.pad(x_nchw, ((0, 0), (0, 0),
                                 (padding, padding), (padding, padding)))
    else:
        x_pad = x_nchw
    Hp, Wp = x_pad.shape[2], x_pad.shape[3]
    x_flat = x_pad.reshape(N, C_IN, Hp * Wp).astype(jnp.float32)

    # Stride-1 output extent of the flat-shift trick (strided output decimates this).
    H1 = Hp - dilation * (KH - 1)
    W1 = Wp - dilation * (KW - 1)
    L = (H1 - 1) * Wp + W1          # last valid flat index + 1; all tap slices stay in-bounds

    # Tiny parameter tables, laid out for per-sublane (channel) broadcast in VMEM.
    wdw_t = w_dw.reshape(C_IN, KH * KW).astype(jnp.float32)
    bdw_c = b_dw.reshape(C_IN, 1).astype(jnp.float32)
    wpw_m = w_pw.reshape(C_OUT, C_IN).astype(jnp.float32)
    bpw_c = b_pw.reshape(C_OUT, 1).astype(jnp.float32)

    kernel = functools.partial(
        _dwsep_kernel, KH=KH, KW=KW, Wp=Wp, H_OUT=H_OUT, W_OUT=W_OUT,
        C_IN=C_IN, STRIDE=stride, DIL=dilation, L=L)

    flops = 2 * N * H_OUT * W_OUT * (KH * KW * C_IN + C_IN * C_OUT)
    bytes_accessed = 4 * (N * C_IN * Hp * Wp
                          + C_IN * KH * KW + C_IN + C_IN * C_OUT + C_OUT
                          + N * C_OUT * H_OUT * W_OUT)

    out = pl.pallas_call(
        kernel,
        out_shape=jax.ShapeDtypeStruct((N, C_OUT, H_OUT * W_OUT), jnp.float32),
        grid_spec=pltpu.PrefetchScalarGridSpec(
            num_scalar_prefetch=0,
            grid=(N,),  # parallel over batch -> 2-way split across v7x's 2 TCs
            in_specs=[
                pl.BlockSpec((1, C_IN, Hp * Wp), lambda b: (b, 0, 0)),
                pl.BlockSpec((C_IN, KH * KW), lambda b: (0, 0)),
                pl.BlockSpec((C_IN, 1), lambda b: (0, 0)),
                pl.BlockSpec((C_OUT, C_IN), lambda b: (0, 0)),
                pl.BlockSpec((C_OUT, 1), lambda b: (0, 0)),
            ],
            out_specs=pl.BlockSpec((1, C_OUT, H_OUT * W_OUT),
                                   lambda b: (b, 0, 0)),
            scratch_shapes=[
                pltpu.VMEM((C_IN, L), jnp.float32),
                pltpu.VMEM((C_IN, H_OUT * W_OUT), jnp.float32),
            ]),
        compiler_params=pltpu.CompilerParams(
            dimension_semantics=("parallel",)),
        cost_estimate=pl.CostEstimate(flops=flops, transcendentals=0,
                                      bytes_accessed=bytes_accessed),
    )(x_flat, wdw_t, bdw_c, wpw_m, bpw_c)

    # (N, C_OUT, H_OUT*W_OUT) is byte-identical to NCHW -> free reshape.
    return out.reshape(N, C_OUT, H_OUT, W_OUT)


def _reference(x, w_dw, b_dw, w_pw, b_pw, *, stride, padding, dilation):
    # Pure-JAX reference mirroring torch semantics (NCHW, grouped conv).
    C_IN = x.shape[1]
    y = lax.conv_general_dilated(
        x, w_dw, window_strides=(stride, stride),
        padding=((padding, padding), (padding, padding)),
        rhs_dilation=(dilation, dilation),
        dimension_numbers=("NCHW", "OIHW", "NCHW"),
        feature_group_count=C_IN)
    y = jnp.maximum(y + b_dw.reshape(1, -1, 1, 1), 0.0)
    z = lax.conv_general_dilated(
        y, w_pw, window_strides=(1, 1), padding="VALID",
        dimension_numbers=("NCHW", "OIHW", "NCHW"))
    return jnp.maximum(z + b_pw.reshape(1, -1, 1, 1), 0.0)


if __name__ == "__main__":
    # Small shapes consistent with the module: N=2, C_in=4, C_out=8, 16x16, k=3.
    N, C_IN, C_OUT, H, W, K = 2, 4, 8, 16, 16, 3

    key = jax.random.PRNGKey(0)
    k1, k2, k3, k4, k5 = jax.random.split(key, 5)
    x = jax.random.normal(k1, (N, C_IN, H, W), jnp.float32)
    # Deterministic (kaiming-like scaled normal) parameter init.
    w_dw = jax.random.normal(k2, (C_IN, 1, K, K), jnp.float32) * (2.0 / (K * K)) ** 0.5
    b_dw = jax.random.normal(k3, (C_IN,), jnp.float32) * 0.01
    w_pw = jax.random.normal(k4, (C_OUT, C_IN, 1, 1), jnp.float32) * (2.0 / C_IN) ** 0.5
    b_pw = jax.random.normal(k5, (C_OUT,), jnp.float32) * 0.01

    configs = [
        dict(stride=1, padding=1, dilation=1),   # the common 'same' 3x3 case
        dict(stride=1, padding=2, dilation=2),   # dilated 3x3 (checks tap/halo offsets)
    ]
    for cfg in configs:
        out = depthwise_separable_conv(x, w_dw, b_dw, w_pw, b_pw, **cfg)
        out = jax.block_until_ready(out)
        ref = _reference(x, w_dw, b_dw, w_pw, b_pw, **cfg)
        assert out.shape == ref.shape, (out.shape, ref.shape, cfg)
        assert jnp.allclose(out, ref, atol=1e-4, rtol=1e-4), cfg

    print("KERNEL_OK")
</pallas_src>

<mosaic_0001>
module attributes {stable_mosaic.version = 11 : i64} {
  func.func @_dwsep_kernel(%arg0: i32, %arg1: memref<1x4x324xf32, #tpu.memory_space<vmem>>, %arg2: memref<4x9xf32, #tpu.memory_space<vmem>>, %arg3: memref<4x1xf32, #tpu.memory_space<vmem>>, %arg4: memref<8x4xf32, #tpu.memory_space<vmem>>, %arg5: memref<8x1xf32, #tpu.memory_space<vmem>>, %arg6: memref<1x8x256xf32, #tpu.memory_space<vmem>>, %arg7: memref<4x286xf32, #tpu.memory_space<vmem>>, %arg8: memref<4x256xf32, #tpu.memory_space<vmem>>) attributes {dimension_semantics = [#tpu.dimension_semantics<parallel>], iteration_bounds = array<i64: 2>, scalar_prefetch = 0 : i64, scratch_operands = 2 : i64, tpu.core_type = #tpu.core_type<tc>, window_params = [{transform_indices = @transform_0, window_bounds = array<i64: 1, 4, 324>}, {pipeline_mode = #tpu.pipeline_mode<synchronous>, transform_indices = @transform_1, window_bounds = array<i64: 4, 9>}, {pipeline_mode = #tpu.pipeline_mode<synchronous>, transform_indices = @transform_2, window_bounds = array<i64: 4, 1>}, {pipeline_mode = #tpu.pipeline_mode<synchronous>, transform_indices = @transform_3, window_bounds = array<i64: 8, 4>}, {pipeline_mode = #tpu.pipeline_mode<synchronous>, transform_indices = @transform_4, window_bounds = array<i64: 8, 1>}, {transform_indices = @transform_5, window_bounds = array<i64: 1, 8, 256>}]} {
    %c0 = arith.constant 0 : index
    %c0_0 = arith.constant 0 : index
    %c0_1 = arith.constant 0 : index
    %0 = vector.load %arg1[%c0, %c0_0, %c0_1] : memref<1x4x324xf32, #tpu.memory_space<vmem>>, vector<1x4x286xf32>
    %1 = vector.shape_cast %0 : vector<1x4x286xf32> to vector<4x286xf32>
    %c0_2 = arith.constant 0 : index
    %c0_3 = arith.constant 0 : index
    %2 = vector.load %arg2[%c0_2, %c0_3] : memref<4x9xf32, #tpu.memory_space<vmem>>, vector<4x1xf32>
    %3 = vector.broadcast %2 : vector<4x1xf32> to vector<4x286xf32>
    %4 = arith.mulf %1, %3 : vector<4x286xf32>
    %c0_4 = arith.constant 0 : index
    %c0_5 = arith.constant 0 : index
    %c1 = arith.constant 1 : index
    %5 = vector.load %arg1[%c0_4, %c0_5, %c1] : memref<1x4x324xf32, #tpu.memory_space<vmem>>, vector<1x4x286xf32>
    %6 = vector.shape_cast %5 : vector<1x4x286xf32> to vector<4x286xf32>
    %c0_6 = arith.constant 0 : index
    %c1_7 = arith.constant 1 : index
    %7 = vector.load %arg2[%c0_6, %c1_7] : memref<4x9xf32, #tpu.memory_space<vmem>>, vector<4x1xf32>
    %8 = vector.broadcast %7 : vector<4x1xf32> to vector<4x286xf32>
    %9 = arith.mulf %6, %8 : vector<4x286xf32>
    %10 = arith.addf %4, %9 : vector<4x286xf32>
    %c0_8 = arith.constant 0 : index
    %c0_9 = arith.constant 0 : index
    %c2 = arith.constant 2 : index
    %11 = vector.load %arg1[%c0_8, %c0_9, %c2] : memref<1x4x324xf32, #tpu.memory_space<vmem>>, vector<1x4x286xf32>
    %12 = vector.shape_cast %11 : vector<1x4x286xf32> to vector<4x286xf32>
    %c0_10 = arith.constant 0 : index
    %c2_11 = arith.constant 2 : index
    %13 = vector.load %arg2[%c0_10, %c2_11] : memref<4x9xf32, #tpu.memory_space<vmem>>, vector<4x1xf32>
    %14 = vector.broadcast %13 : vector<4x1xf32> to vector<4x286xf32>
    %15 = arith.mulf %12, %14 : vector<4x286xf32>
    %16 = arith.addf %10, %15 : vector<4x286xf32>
    %c0_12 = arith.constant 0 : index
    %c0_13 = arith.constant 0 : index
    %c18 = arith.constant 18 : index
    %17 = vector.load %arg1[%c0_12, %c0_13, %c18] : memref<1x4x324xf32, #tpu.memory_space<vmem>>, vector<1x4x286xf32>
    %18 = vector.shape_cast %17 : vector<1x4x286xf32> to vector<4x286xf32>
    %c0_14 = arith.constant 0 : index
    %c3 = arith.constant 3 : index
    %19 = vector.load %arg2[%c0_14, %c3] : memref<4x9xf32, #tpu.memory_space<vmem>>, vector<4x1xf32>
    %20 = vector.broadcast %19 : vector<4x1xf32> to vector<4x286xf32>
    %21 = arith.mulf %18, %20 : vector<4x286xf32>
    %22 = arith.addf %16, %21 : vector<4x286xf32>
    %c0_15 = arith.constant 0 : index
    %c0_16 = arith.constant 0 : index
    %c19 = arith.constant 19 : index
    %23 = vector.load %arg1[%c0_15, %c0_16, %c19] : memref<1x4x324xf32, #tpu.memory_space<vmem>>, vector<1x4x286xf32>
    %24 = vector.shape_cast %23 : vector<1x4x286xf32> to vector<4x286xf32>
    %c0_17 = arith.constant 0 : index
    %c4 = arith.constant 4 : index
    %25 = vector.load %arg2[%c0_17, %c4] : memref<4x9xf32, #tpu.memory_space<vmem>>, vector<4x1xf32>
    %26 = vector.broadcast %25 : vector<4x1xf32> to vector<4x286xf32>
    %27 = arith.mulf %24, %26 : vector<4x286xf32>
    %28 = arith.addf %22, %27 : vector<4x286xf32>
    %c0_18 = arith.constant 0 : index
    %c0_19 = arith.constant 0 : index
    %c20 = arith.constant 20 : index
    %29 = vector.load %arg1[%c0_18, %c0_19, %c20] : memref<1x4x324xf32, #tpu.memory_space<vmem>>, vector<1x4x286xf32>
    %30 = vector.shape_cast %29 : vector<1x4x286xf32> to vector<4x286xf32>
    %c0_20 = arith.constant 0 : index
    %c5 = arith.constant 5 : index
    %31 = vector.load %arg2[%c0_20, %c5] : memref<4x9xf32, #tpu.memory_space<vmem>>, vector<4x1xf32>
    %32 = vector.broadcast %31 : vector<4x1xf32> to vector<4x286xf32>
    %33 = arith.mulf %30, %32 : vector<4x286xf32>
    %34 = arith.addf %28, %33 : vector<4x286xf32>
    %c0_21 = arith.constant 0 : index
    %c0_22 = arith.constant 0 : index
    %c36 = arith.constant 36 : index
    %35 = vector.load %arg1[%c0_21, %c0_22, %c36] : memref<1x4x324xf32, #tpu.memory_space<vmem>>, vector<1x4x286xf32>
    %36 = vector.shape_cast %35 : vector<1x4x286xf32> to vector<4x286xf32>
    %c0_23 = arith.constant 0 : index
    %c6 = arith.constant 6 : index
    %37 = vector.load %arg2[%c0_23, %c6] : memref<4x9xf32, #tpu.memory_space<vmem>>, vector<4x1xf32>
    %38 = vector.broadcast %37 : vector<4x1xf32> to vector<4x286xf32>
    %39 = arith.mulf %36, %38 : vector<4x286xf32>
    %40 = arith.addf %34, %39 : vector<4x286xf32>
    %c0_24 = arith.constant 0 : index
    %c0_25 = arith.constant 0 : index
    %c37 = arith.constant 37 : index
    %41 = vector.load %arg1[%c0_24, %c0_25, %c37] : memref<1x4x324xf32, #tpu.memory_space<vmem>>, vector<1x4x286xf32>
    %42 = vector.shape_cast %41 : vector<1x4x286xf32> to vector<4x286xf32>
    %c0_26 = arith.constant 0 : index
    %c7 = arith.constant 7 : index
    %43 = vector.load %arg2[%c0_26, %c7] : memref<4x9xf32, #tpu.memory_space<vmem>>, vector<4x1xf32>
    %44 = vector.broadcast %43 : vector<4x1xf32> to vector<4x286xf32>
    %45 = arith.mulf %42, %44 : vector<4x286xf32>
    %46 = arith.addf %40, %45 : vector<4x286xf32>
    %c0_27 = arith.constant 0 : index
    %c0_28 = arith.constant 0 : index
    %c38 = arith.constant 38 : index
    %47 = vector.load %arg1[%c0_27, %c0_28, %c38] : memref<1x4x324xf32, #tpu.memory_space<vmem>>, vector<1x4x286xf32>
    %48 = vector.shape_cast %47 : vector<1x4x286xf32> to vector<4x286xf32>
    %c0_29 = arith.constant 0 : index
    %c8 = arith.constant 8 : index
    %49 = vector.load %arg2[%c0_29, %c8] : memref<4x9xf32, #tpu.memory_space<vmem>>, vector<4x1xf32>
    %50 = vector.broadcast %49 : vector<4x1xf32> to vector<4x286xf32>
    %51 = arith.mulf %48, %50 : vector<4x286xf32>
    %52 = arith.addf %46, %51 : vector<4x286xf32>
    %c0_30 = arith.constant 0 : index
    %c0_31 = arith.constant 0 : index
    %53 = vector.load %arg3[%c0_30, %c0_31] : memref<4x1xf32, #tpu.memory_space<vmem>>, vector<4x1xf32>
    %54 = vector.broadcast %53 : vector<4x1xf32> to vector<4x286xf32>
    %55 = arith.addf %52, %54 : vector<4x286xf32>
    %cst = arith.constant 0.000000e+00 : f32
    %56 = vector.broadcast %cst : f32 to vector<4x286xf32>
    %57 = arith.maximumf %55, %56 : vector<4x286xf32>
    %c0_32 = arith.constant 0 : index
    %c0_33 = arith.constant 0 : index
    %58 = vector.load %arg7[%c0_32, %c0_33] : memref<4x286xf32, #tpu.memory_space<vmem>>, vector<4x286xf32>
    tpu.vector_store %arg7[%c0_32, %c0_33], %57 {strides = array<i32>} : memref<4x286xf32, #tpu.memory_space<vmem>>, vector<4x286xf32>,
    %c0_34 = arith.constant 0 : index
    %c0_35 = arith.constant 0 : index
    %59 = vector.load %arg7[%c0_34, %c0_35] : memref<4x286xf32, #tpu.memory_space<vmem>>, vector<4x16xf32>
    %c0_36 = arith.constant 0 : index
    %c0_37 = arith.constant 0 : index
    %60 = vector.load %arg8[%c0_36, %c0_37] : memref<4x256xf32, #tpu.memory_space<vmem>>, vector<4x16xf32>
    tpu.vector_store %arg8[%c0_36, %c0_37], %59 {strides = array<i32>} : memref<4x256xf32, #tpu.memory_space<vmem>>, vector<4x16xf32>,
    %c0_38 = arith.constant 0 : index
    %c18_39 = arith.constant 18 : index
    %61 = vector.load %arg7[%c0_38, %c18_39] : memref<4x286xf32, #tpu.memory_space<vmem>>, vector<4x16xf32>
    %c0_40 = arith.constant 0 : index
    %c16 = arith.constant 16 : index
    %62 = vector.load %arg8[%c0_40, %c16] : memref<4x256xf32, #tpu.memory_space<vmem>>, vector<4x16xf32>
    tpu.vector_store %arg8[%c0_40, %c16], %61 {strides = array<i32>} : memref<4x256xf32, #tpu.memory_space<vmem>>, vector<4x16xf32>,
    %c0_41 = arith.constant 0 : index
    %c36_42 = arith.constant 36 : index
    %63 = vector.load %arg7[%c0_41, %c36_42] : memref<4x286xf32, #tpu.memory_space<vmem>>, vector<4x16xf32>
    %c0_43 = arith.constant 0 : index
    %c32 = arith.constant 32 : index
    %64 = vector.load %arg8[%c0_43, %c32] : memref<4x256xf32, #tpu.memory_space<vmem>>, vector<4x16xf32>
    tpu.vector_store %arg8[%c0_43, %c32], %63 {strides = array<i32>} : memref<4x256xf32, #tpu.memory_space<vmem>>, vector<4x16xf32>,
    %c0_44 = arith.constant 0 : index
    %c54 = arith.constant 54 : index
    %65 = vector.load %arg7[%c0_44, %c54] : memref<4x286xf32, #tpu.memory_space<vmem>>, vector<4x16xf32>
    %c0_45 = arith.constant 0 : index
    %c48 = arith.constant 48 : index
    %66 = vector.load %arg8[%c0_45, %c48] : memref<4x256xf32, #tpu.memory_space<vmem>>, vector<4x16xf32>
    tpu.vector_store %arg8[%c0_45, %c48], %65 {strides = array<i32>} : memref<4x256xf32, #tpu.memory_space<vmem>>, vector<4x16xf32>,
    %c0_46 = arith.constant 0 : index
    %c72 = arith.constant 72 : index
    %67 = vector.load %arg7[%c0_46, %c72] : memref<4x286xf32, #tpu.memory_space<vmem>>, vector<4x16xf32>
    %c0_47 = arith.constant 0 : index
    %c64 = arith.constant 64 : index
    %68 = vector.load %arg8[%c0_47, %c64] : memref<4x256xf32, #tpu.memory_space<vmem>>, vector<4x16xf32>
    tpu.vector_store %arg8[%c0_47, %c64], %67 {strides = array<i32>} : memref<4x256xf32, #tpu.memory_space<vmem>>, vector<4x16xf32>,
    %c0_48 = arith.constant 0 : index
    %c90 = arith.constant 90 : index
    %69 = vector.load %arg7[%c0_48, %c90] : memref<4x286xf32, #tpu.memory_space<vmem>>, vector<4x16xf32>
    %c0_49 = arith.constant 0 : index
    %c80 = arith.constant 80 : index
    %70 = vector.load %arg8[%c0_49, %c80] : memref<4x256xf32, #tpu.memory_space<vmem>>, vector<4x16xf32>
    tpu.vector_store %arg8[%c0_49, %c80], %69 {strides = array<i32>} : memref<4x256xf32, #tpu.memory_space<vmem>>, vector<4x16xf32>,
    %c0_50 = arith.constant 0 : index
    %c108 = arith.constant 108 : index
    %71 = vector.load %arg7[%c0_50, %c108] : memref<4x286xf32, #tpu.memory_space<vmem>>, vector<4x16xf32>
    %c0_51 = arith.constant 0 : index
    %c96 = arith.constant 96 : index
    %72 = vector.load %arg8[%c0_51, %c96] : memref<4x256xf32, #tpu.memory_space<vmem>>, vector<4x16xf32>
    tpu.vector_store %arg8[%c0_51, %c96], %71 {strides = array<i32>} : memref<4x256xf32, #tpu.memory_space<vmem>>, vector<4x16xf32>,
    %c0_52 = arith.constant 0 : index
    %c126 = arith.constant 126 : index
    %73 = vector.load %arg7[%c0_52, %c126] : memref<4x286xf32, #tpu.memory_space<vmem>>, vector<4x16xf32>
    %c0_53 = arith.constant 0 : index
    %c112 = arith.constant 112 : index
    %74 = vector.load %arg8[%c0_53, %c112] : memref<4x256xf32, #tpu.memory_space<vmem>>, vector<4x16xf32>
    tpu.vector_store %arg8[%c0_53, %c112], %73 {strides = array<i32>} : memref<4x256xf32, #tpu.memory_space<vmem>>, vector<4x16xf32>,
    %c0_54 = arith.constant 0 : index
    %c144 = arith.constant 144 : index
    %75 = vector.load %arg7[%c0_54, %c144] : memref<4x286xf32, #tpu.memory_space<vmem>>, vector<4x16xf32>
    %c0_55 = arith.constant 0 : index
    %c128 = arith.constant 128 : index
    %76 = vector.load %arg8[%c0_55, %c128] : memref<4x256xf32, #tpu.memory_space<vmem>>, vector<4x16xf32>
    tpu.vector_store %arg8[%c0_55, %c128], %75 {strides = array<i32>} : memref<4x256xf32, #tpu.memory_space<vmem>>, vector<4x16xf32>,
    %c0_56 = arith.constant 0 : index
    %c162 = arith.constant 162 : index
    %77 = vector.load %arg7[%c0_56, %c162] : memref<4x286xf32, #tpu.memory_space<vmem>>, vector<4x16xf32>
    %c0_57 = arith.constant 0 : index
    %c144_58 = arith.constant 144 : index
    %78 = vector.load %arg8[%c0_57, %c144_58] : memref<4x256xf32, #tpu.memory_space<vmem>>, vector<4x16xf32>
    tpu.vector_store %arg8[%c0_57, %c144_58], %77 {strides = array<i32>} : memref<4x256xf32, #tpu.memory_space<vmem>>, vector<4x16xf32>,
    %c0_59 = arith.constant 0 : index
    %c180 = arith.constant 180 : index
    %79 = vector.load %arg7[%c0_59, %c180] : memref<4x286xf32, #tpu.memory_space<vmem>>, vector<4x16xf32>
    %c0_60 = arith.constant 0 : index
    %c160 = arith.constant 160 : index
    %80 = vector.load %arg8[%c0_60, %c160] : memref<4x256xf32, #tpu.memory_space<vmem>>, vector<4x16xf32>
    tpu.vector_store %arg8[%c0_60, %c160], %79 {strides = array<i32>} : memref<4x256xf32, #tpu.memory_space<vmem>>, vector<4x16xf32>,
    %c0_61 = arith.constant 0 : index
    %c198 = arith.constant 198 : index
    %81 = vector.load %arg7[%c0_61, %c198] : memref<4x286xf32, #tpu.memory_space<vmem>>, vector<4x16xf32>
    %c0_62 = arith.constant 0 : index
    %c176 = arith.constant 176 : index
    %82 = vector.load %arg8[%c0_62, %c176] : memref<4x256xf32, #tpu.memory_space<vmem>>, vector<4x16xf32>
    tpu.vector_store %arg8[%c0_62, %c176], %81 {strides = array<i32>} : memref<4x256xf32, #tpu.memory_space<vmem>>, vector<4x16xf32>,
    %c0_63 = arith.constant 0 : index
    %c216 = arith.constant 216 : index
    %83 = vector.load %arg7[%c0_63, %c216] : memref<4x286xf32, #tpu.memory_space<vmem>>, vector<4x16xf32>
    %c0_64 = arith.constant 0 : index
    %c192 = arith.constant 192 : index
    %84 = vector.load %arg8[%c0_64, %c192] : memref<4x256xf32, #tpu.memory_space<vmem>>, vector<4x16xf32>
    tpu.vector_store %arg8[%c0_64, %c192], %83 {strides = array<i32>} : memref<4x256xf32, #tpu.memory_space<vmem>>, vector<4x16xf32>,
    %c0_65 = arith.constant 0 : index
    %c234 = arith.constant 234 : index
    %85 = vector.load %arg7[%c0_65, %c234] : memref<4x286xf32, #tpu.memory_space<vmem>>, vector<4x16xf32>
    %c0_66 = arith.constant 0 : index
    %c208 = arith.constant 208 : index
    %86 = vector.load %arg8[%c0_66, %c208] : memref<4x256xf32, #tpu.memory_space<vmem>>, vector<4x16xf32>
    tpu.vector_store %arg8[%c0_66, %c208], %85 {strides = array<i32>} : memref<4x256xf32, #tpu.memory_space<vmem>>, vector<4x16xf32>,
    %c0_67 = arith.constant 0 : index
    %c252 = arith.constant 252 : index
    %87 = vector.load %arg7[%c0_67, %c252] : memref<4x286xf32, #tpu.memory_space<vmem>>, vector<4x16xf32>
    %c0_68 = arith.constant 0 : index
    %c224 = arith.constant 224 : index
    %88 = vector.load %arg8[%c0_68, %c224] : memref<4x256xf32, #tpu.memory_space<vmem>>, vector<4x16xf32>
    tpu.vector_store %arg8[%c0_68, %c224], %87 {strides = array<i32>} : memref<4x256xf32, #tpu.memory_space<vmem>>, vector<4x16xf32>,
    %c0_69 = arith.constant 0 : index
    %c270 = arith.constant 270 : index
    %89 = vector.load %arg7[%c0_69, %c270] : memref<4x286xf32, #tpu.memory_space<vmem>>, vector<4x16xf32>
    %c0_70 = arith.constant 0 : index
    %c240 = arith.constant 240 : index
    %90 = vector.load %arg8[%c0_70, %c240] : memref<4x256xf32, #tpu.memory_space<vmem>>, vector<4x16xf32>
    tpu.vector_store %arg8[%c0_70, %c240], %89 {strides = array<i32>} : memref<4x256xf32, #tpu.memory_space<vmem>>, vector<4x16xf32>,
    %c0_71 = arith.constant 0 : index
    %c0_72 = arith.constant 0 : index
    %91 = vector.load %arg8[%c0_71, %c0_72] : memref<4x256xf32, #tpu.memory_space<vmem>>, vector<1x256xf32>
    %c0_73 = arith.constant 0 : index
    %c0_74 = arith.constant 0 : index
    %92 = vector.load %arg4[%c0_73, %c0_74] : memref<8x4xf32, #tpu.memory_space<vmem>>, vector<8x1xf32>
    %93 = vector.broadcast %91 : vector<1x256xf32> to vector<8x256xf32>
    %94 = vector.broadcast %92 : vector<8x1xf32> to vector<8x256xf32>
    %95 = arith.mulf %93, %94 : vector<8x256xf32>
    %c1_75 = arith.constant 1 : index
    %c0_76 = arith.constant 0 : index
    %96 = vector.load %arg8[%c1_75, %c0_76] : memref<4x256xf32, #tpu.memory_space<vmem>>, vector<1x256xf32>
    %c0_77 = arith.constant 0 : index
    %c1_78 = arith.constant 1 : index
    %97 = vector.load %arg4[%c0_77, %c1_78] : memref<8x4xf32, #tpu.memory_space<vmem>>, vector<8x1xf32>
    %98 = vector.broadcast %96 : vector<1x256xf32> to vector<8x256xf32>
    %99 = vector.broadcast %97 : vector<8x1xf32> to vector<8x256xf32>
    %100 = arith.mulf %98, %99 : vector<8x256xf32>
    %101 = arith.addf %95, %100 : vector<8x256xf32>
    %c2_79 = arith.constant 2 : index
    %c0_80 = arith.constant 0 : index
    %102 = vector.load %arg8[%c2_79, %c0_80] : memref<4x256xf32, #tpu.memory_space<vmem>>, vector<1x256xf32>
    %c0_81 = arith.constant 0 : index
    %c2_82 = arith.constant 2 : index
    %103 = vector.load %arg4[%c0_81, %c2_82] : memref<8x4xf32, #tpu.memory_space<vmem>>, vector<8x1xf32>
    %104 = vector.broadcast %102 : vector<1x256xf32> to vector<8x256xf32>
    %105 = vector.broadcast %103 : vector<8x1xf32> to vector<8x256xf32>
    %106 = arith.mulf %104, %105 : vector<8x256xf32>
    %107 = arith.addf %101, %106 : vector<8x256xf32>
    %c3_83 = arith.constant 3 : index
    %c0_84 = arith.constant 0 : index
    %108 = vector.load %arg8[%c3_83, %c0_84] : memref<4x256xf32, #tpu.memory_space<vmem>>, vector<1x256xf32>
    %c0_85 = arith.constant 0 : index
    %c3_86 = arith.constant 3 : index
    %109 = vector.load %arg4[%c0_85, %c3_86] : memref<8x4xf32, #tpu.memory_space<vmem>>, vector<8x1xf32>
    %110 = vector.broadcast %108 : vector<1x256xf32> to vector<8x256xf32>
    %111 = vector.broadcast %109 : vector<8x1xf32> to vector<8x256xf32>
    %112 = arith.mulf %110, %111 : vector<8x256xf32>
    %113 = arith.addf %107, %112 : vector<8x256xf32>
    %c0_87 = arith.constant 0 : index
    %c0_88 = arith.constant 0 : index
    %114 = vector.load %arg5[%c0_87, %c0_88] : memref<8x1xf32, #tpu.memory_space<vmem>>, vector<8x1xf32>
    %115 = vector.broadcast %114 : vector<8x1xf32> to vector<8x256xf32>
    %116 = arith.addf %113, %115 : vector<8x256xf32>
    %cst_89 = arith.constant 0.000000e+00 : f32
    %117 = vector.broadcast %cst_89 : f32 to vector<8x256xf32>
    %118 = arith.maximumf %116, %117 : vector<8x256xf32>
    %c0_90 = arith.constant 0 : index
    %c0_91 = arith.constant 0 : index
    %c0_92 = arith.constant 0 : index
    %119 = vector.load %arg6[%c0_90, %c0_91, %c0_92] : memref<1x8x256xf32, #tpu.memory_space<vmem>>, vector<1x8x256xf32>
    %120 = vector.shape_cast %119 : vector<1x8x256xf32> to vector<8x256xf32>
    %121 = vector.shape_cast %118 : vector<8x256xf32> to vector<1x8x256xf32>
    tpu.vector_store %arg6[%c0_90, %c0_91, %c0_92], %121 {strides = array<i32>} : memref<1x8x256xf32, #tpu.memory_space<vmem>>, vector<1x8x256xf32>,
    return
  }
  func.func @transform_0(%arg0: i32) -> (i32, i32, i32) {
    %c0_i32 = arith.constant 0 : i32
    %c0_i32_0 = arith.constant 0 : i32
    %c0_i32_1 = arith.constant 0 : i32
    return %arg0, %c0_i32, %c0_i32_0 : i32, i32, i32
  }
  func.func @transform_1(%arg0: i32) -> (i32, i32) {
    %c0_i32 = arith.constant 0 : i32
    %c0_i32_0 = arith.constant 0 : i32
    %c0_i32_1 = arith.constant 0 : i32
    return %c0_i32, %c0_i32_0 : i32, i32
  }
  func.func @transform_2(%arg0: i32) -> (i32, i32) {
    %c0_i32 = arith.constant 0 : i32
    %c0_i32_0 = arith.constant 0 : i32
    %c0_i32_1 = arith.constant 0 : i32
    return %c0_i32, %c0_i32_0 : i32, i32
  }
  func.func @transform_3(%arg0: i32) -> (i32, i32) {
    %c0_i32 = arith.constant 0 : i32
    %c0_i32_0 = arith.constant 0 : i32
    %c0_i32_1 = arith.constant 0 : i32
    return %c0_i32, %c0_i32_0 : i32, i32
  }
  func.func @transform_4(%arg0: i32) -> (i32, i32) {
    %c0_i32 = arith.constant 0 : i32
    %c0_i32_0 = arith.constant 0 : i32
    %c0_i32_1 = arith.constant 0 : i32
    return %c0_i32, %c0_i32_0 : i32, i32
  }
  func.func @transform_5(%arg0: i32) -> (i32, i32, i32) {
    %c0_i32 = arith.constant 0 : i32
    %c0_i32_0 = arith.constant 0 : i32
    %c0_i32_1 = arith.constant 0 : i32
    return %arg0, %c0_i32, %c0_i32_0 : i32, i32, i32
  }
}

</mosaic_0001>

<bundles_post_ra>
// kernel: tpu_custom_call.1
= control target key start
LH: loop header
LB: loop body
LE: loop exit
PB: predicated region body
PF: predicated region fallthrough
CT: control target
= control target key end

     0   :  { %10 = vsyncpa [#allocation5], 0  ;;  %s1171_s0 = inlined_call_operand.vmem [shape: f32[2,4,324], index: 0, kind: input, shape index: {}]   ;;  %s1172_s1 = inlined_call_operand.hbm [shape: f32[4,9], index: 1, kind: input, shape index: {}]   ;;  %s1173_s2 = inlined_call_operand.vmem [shape: f32[4,1], index: 2, kind: input, shape index: {}]   ;;  %s1174_s3 = inlined_call_operand.vmem [shape: f32[8,4], index: 3, kind: input, shape index: {}]   ;;  %s1175_s4 = inlined_call_operand.vmem [shape: f32[8,1], index: 4, kind: input, shape index: {}]   ;;  %s1176_s5 = inlined_call_operand.hbm [shape: f32[2,8,256], index: 5, kind: output, shape index: {}]  }
   0x1   :  { %11 = vsyncpa [#allocation6], 0 }
   0x2   :  { %13 = vsyncpa [#allocation6 + $0x1], 0  ;;  %s1004_s18 = smov 0   ;;  %s1006_s19 = smov 0  }
   0x3   :  { %s1008_s20 = smov 0   ;;  %s1010_s21 = smov 0  }
   0x4 LB: > { %s1025_s22 = sadd.s32 4294967295, %s941_s21   ;;  %s735_s23 = sadd.s32 4294967294, %s941_s21   ;;  %s941_s21 = sphi %s1010_s21, %s1182_s21   ;;  %s937_s20 = sphi %s1008_s20, %s1181_s20   ;;  %s933_s19 = sphi %s1006_s19, %s1180_s19   ;;  %s929_s18 = sphi %s1004_s18, %s1179_s18  }
   0x5   : > { %s1029_s24 = sadd.s32 1, %s941_s21   ;;  %s136_s25 = sadd.s32 1, %s937_s20 }
   0x6   : > { %s133_s26 = ssub.s32 %s941_s21, %s1029_s24  ;;  %p146_p0 = scmp.ne.s32.totalorder %s937_s20, %s933_s19 }
   0x7   : > { %p134_p1 = scmp.eq.s32.totalorder %s133_s26, 0  ;;  %p147_p2 = scmp.eq.s32.totalorder %s1025_s22, 1 }
   0x8   : > { %p152_p3 = scmp.ne.s32.totalorder %s933_s19, %s929_s18  ;;  %p153_p4 = scmp.eq.s32.totalorder %s735_s23, 1 }
   0x9   : > { %s1040_s27 = scalar_select %p134_p1, %s937_s20, %s136_s25  }
   0xa   : > { %p1042_p5 = por %p147_p2, %p146_p0  ;;  %p1046_p6 = por %p153_p4, %p152_p3 }
   0xb   : > { %p736_p7 = scmp.ge.s32.totalorder %s941_s21, 1  ;;  %p160_p8 = scmp.lt.s32.totalorder %s941_s21, 3 }
   0xc   : > { %p764_p9 = scmp.eq.s32.totalorder %s1025_s22, 0  ;;  %s172_s7 = sshll.u32 %s1172_s1, 4  ;;  %s173_s7 = int_to_ptr.hbm [resolvable:$true] %s172_s7 }
   0xd   : > { %p161_p10 = pnand %p736_p7, %p160_p8  ;;  %s943_s8 = smov [#allocation4]  }
   0xe   : > { %s174_s9 = sshll.u32 %s943_s8, 4  ;;  %s175_s9 = int_to_ptr.vmem [resolvable:$true] %s174_s9 }
   0xf   : > { %p756_p11 = pneg %p161_p10  ;;  %204 = sbr.rel (%p161_p10) target bundleno = 494 (0x1ee), region = 40 }
  0x11   : > { %p757_p12 = pnand %p764_p9, %p756_p11 }
  0x13   : > { %759 = dma.hbm_to_vmem [thread:$0]  (!%p757_p12), %s173_s7, 64, %s175_s9, [#allocation5]  }
  0x14   : > { %920 = dma.done.wait (%p764_p9), [#allocation5], 64  }
  0x15   : > { %922 = vsyncadd (%p764_p9), [#allocation5], 4294967232  ;;  %v944_v0 = vmov 3   ;;  %v945_v1 = vmov 1   ;;  %v946_v2 = vmov 5   ;;  %v947_v4 = vmov 4  }
  0x16   : > { %832 = vset.pattern.permute.xlu1 %v944_v0  ;;  %830 = vset.pattern.permute.xlu0 %v945_v1  ;;  %v240_v3 = vld [vmem:[#allocation4] sm:$0xf]  ;;  %v948_v5 = vmov 2   ;;  %v949_v6 = vmov 6   ;;  %v950_v7 = vmov 7   ;;  %v951_v8 = vmov 0  }
  0x17   : > { %834 = vset.pattern.permute.xlu2 %v946_v2  ;;  %304 = vperm.xlu1 %832, %v240_v3   ;;  %v952_v9 = vmov 8   ;;  %p233_p13 = scmp.lt.s32.totalorder %s1025_s22, 1  ;;  %v953_v10 = vmov 839922192   ;;  %s954_s15 = smov 127   ;;  %vm270_vm0 = vcmask 1043456  }
  0x18   : > { %253 = vperm.xlu0 %830, %v240_v3   ;;  %354 = vperm.xlu2 %834, %v240_v3   ;;  %v246_v11 = vunpack.c.l.s4 %v953_v10  ;;  %s955_s16 = smov 110   ;;  %s956_s17 = smov 126   ;;  %v453_v42 = vld [vmem:[%s1173_s2] sm:$0xf]  ;;  %vm272_vm1 = vcmask 1039360   ;;  %vm297_vm2 = vcmask 1031168  }
  0x19   : > { %s234_s10 = scalar_select %p233_p13, %s1025_s22, 1  ;;  %vm322_vm3 = vcmask 900096   ;;  %vm347_vm4 = vcmask 891904   ;;  %vm372_vm5 = vcmask 883712   ;;  %vm397_vm6 = vcmask 752640  }
  0x1a   : > { %v1065_v12 = vunpack.c.0.s8 %v246_v11  ;;  %s957_s23 = smov 109   ;;  %s958_s25 = smov 92   ;;  %vm422_vm7 = vcmask 744448   ;;  %vm468_vm8 = vcmask 240640   ;;  %vm447_vm9 = vcmask 736256  }
  0x1b   : > { %s749_s11 = smul.u32 12, %s234_s10  ;;  %s959_s26 = smov 108   ;;  %vm471_vm10 = vcmask 125952   ;;  %vm478_vm11 = vcmask 257152   ;;  %vm485_vm12 = vcmask 388352   ;;  %vm492_vm13 = vcmask 519552  }
  0x1c   : > { %s960_s30 = smov 91   ;;  %s961_s8 = smov 90   ;;  %vm499_vm14 = vcmask 650752   ;;  %vm506_vm15 = vcmask 781952  }
  0x1d   : > { %s237_s14 = scalar_lea.vmem %s1171_s0, %s749_s11  ;;  %s962_s9 = smov 112  }
  0x1e   : > { %v1067_v14 = vld [vmem:[%s237_s14] sm:$0xff]  ;;  %v1069_v15 = vld [vmem:[%s237_s14 + $0x8] sm:$0xf]  ;;  %s963_s10 = smov 124   ;;  %s964_s11 = smov 122  }
  0x1f   : > { %833 = vset.pattern.permute.xlu1 %v947_v4  ;;  %s965_s12 = smov 120   ;;  %s966_s13 = smov 100  }
  0x20   : > { %831 = vset.pattern.permute.xlu0 %v948_v5  ;;  %329 = vperm.xlu1 %833, %v240_v3   ;;  %s967_s14 = smov 106   ;;  %s895_s6 = scalar_lea.hbm %s1176_s5, 32 }
  0x21   : > { %279 = vperm.xlu0 %831, %v240_v3   ;;  %835 = vset.pattern.permute.xlu2 %v949_v6 }
  0x22   : > { %379 = vperm.xlu2 %835, %v240_v3  }
  0x28   : > { %836 = vset.pattern.permute.xlu1 %v950_v7 }
  0x29   : > { %838 = vset.pattern.permute.xlu0 %v951_v8  ;;  %404 = vperm.xlu1 %836, %v240_v3  }
  0x2a   : > { %243 = vperm.xlu0 %838, %v240_v3   ;;  %837 = vset.pattern.permute.xlu2 %v952_v9 }
  0x2b   : > { %429 = vperm.xlu2 %837, %v240_v3  }
  0x31   : > { %839 = vset.pattern.permute.xlu1 %v951_v8 }
  0x33   : > { %840 = vset.pattern.permute.xlu2 %v945_v1 }
  0x72   : > { %v355_v19 = vpop.permute.xlu2 %354 }
  0x73   : > { %v359_v37 = vperm.slane %v355_v19, %v1065_v12 }
  0x75   : > { %v362_v39 = vmul.f32 %v359_v37, %v1069_v15  ;;  %v361_v40 = vmul.f32 %v359_v37, %v1067_v14 }
  0x7c   : > { %v380_v27 = vpop.permute.xlu2 %379 }
  0x7d   : > { %v384_v31 = vperm.slane %v380_v27, %v1065_v12 }
  0x7f   : > { %v386_v33 = vmul.f32 %v384_v31, %v1067_v14  ;;  %v387_v44 = vmul.f32 %v384_v31, %v1069_v15 }
  0x85   : > { %v430_v43 = vpop.permute.xlu2 %429 }
  0x86   : > { %v434_v45 = vperm.slane %v430_v43, %v1065_v12 }
  0x88   : > { %v437_v46 = vmul.f32 %v434_v45, %v1069_v15  ;;  %v436_v47 = vmul.f32 %v434_v45, %v1067_v14 }
  0x89   : > { %v305_v16 = vpop.permute.xlu1 %304 }
  0x8a   : > { %v254_v13 = vpop.permute.xlu0 %253  ;;  %v309_v18 = vperm.slane %v305_v16, %v1065_v12 }
  0x8b   : > { %v258_v17 = vperm.slane %v254_v13, %v1065_v12 }
  0x8c   : > { %v311_v22 = vmul.f32 %v309_v18, %v1067_v14  ;;  %v312_v35 = vmul.f32 %v309_v18, %v1069_v15 }
  0x8d   : > { %v260_v20 = vmul.f32 %v258_v17, %v1067_v14  ;;  %v261_v21 = vmul.f32 %v258_v17, %v1069_v15 }
  0x8e   : > { %315 = vrot.lane.b32.xlu0 %v311_v22, %s955_s16 }
  0x8f   : > { %266 = vrot.lane.b32.xlu2 %v261_v21, %s954_s15  ;;  %264 = vrot.lane.b32.xlu1 %v260_v20, %s954_s15  ;;  %s968_s15 = smov 118  }
  0x92   : > { %v330_v23 = vpop.permute.xlu1 %329 }
  0x93   : > { %v280_v24 = vpop.permute.xlu0 %279  ;;  %v334_v25 = vperm.slane %v330_v23, %v1065_v12 }
  0x94   : > { %v284_v26 = vperm.slane %v280_v24, %v1065_v12 }
  0x95   : > { %v337_v28 = vmul.f32 %v334_v25, %v1069_v15  ;;  %v336_v32 = vmul.f32 %v334_v25, %v1067_v14 }
  0x96   : > { %v286_v29 = vmul.f32 %v284_v26, %v1067_v14  ;;  %v287_v30 = vmul.f32 %v284_v26, %v1069_v15 }
  0x97   : > { %342 = vrot.lane.b32.xlu0 %v337_v28, %s957_s23 }
  0x98   : > { %292 = vrot.lane.b32.xlu2 %v287_v30, %s956_s17  ;;  %290 = vrot.lane.b32.xlu1 %v286_v29, %s956_s17 }
  0x9b   : > { %v405_v34 = vpop.permute.xlu1 %404 }
  0x9c   : > { %v409_v36 = vperm.slane %v405_v34, %v1065_v12  ;;  %v244_v49 = vpop.permute.xlu0 %243 }
  0x9d   : > { %v248_v56 = vperm.slane %v244_v49, %v1065_v12 }
  0x9e   : > { %v412_v38 = vmul.f32 %v409_v36, %v1069_v15  ;;  %v411_v41 = vmul.f32 %v409_v36, %v1067_v14 }
  0x9f   : > { %390 = vrot.lane.b32.xlu0 %v386_v33, %s958_s25  ;;  %v251_v57 = vmul.f32 %v248_v56, %v1069_v15  ;;  %v250_v6 = vmul.f32 %v248_v56, %v1067_v14 }
  0xa0   : > { %340 = vrot.lane.b32.xlu2 %v336_v32, %s957_s23  ;;  %317 = vrot.lane.b32.xlu1 %v312_v35, %s955_s16  ;;  %s970_s23 = smov 114  }
  0xa7   : > { %417 = vrot.lane.b32.xlu0 %v412_v38, %s960_s30 }
  0xa8   : > { %367 = vrot.lane.b32.xlu2 %v362_v39, %s959_s26  ;;  %365 = vrot.lane.b32.xlu1 %v361_v40, %s959_s26 }
  0xaf   : > { %456 = vperm.xlu0 %838, %v453_v42  }
  0xb0   : > { %415 = vrot.lane.b32.xlu2 %v411_v41, %s960_s30  ;;  %392 = vrot.lane.b32.xlu1 %v387_v44, %s958_s25  ;;  %s972_s25 = smov 116  }
  0xb7   : > { %841 = vset.pattern.permute.xlu0 %v948_v5 }
  0xb8   : > { %442 = vrot.lane.b32.xlu2 %v437_v46, %s961_s8  ;;  %440 = vrot.lane.b32.xlu1 %v436_v47, %s961_s8 }
  0xe9   : > { %v267_v48 = vpop.permute.xlu2 %266 }
  0xea   : > { %v269_v62 = vrot.slane %v267_v48, 4  ;;  %v277_v63 = vadd.f32 %v267_v48, %v251_v57 }
  0xf2   : > { %v293_v50 = vpop.permute.xlu2 %292 }
  0xf3   : > { %v295_v2 = vrot.slane %v293_v50, 4  ;;  %v302_v3 = vadd.f32 %v293_v50, %v277_v63 }
  0xfa   : > { %v341_v53 = vpop.permute.xlu2 %340 }
  0xfb   : > { %v344_v24 = vrot.slane %v341_v53, 4 }
 0x100   : > { %v316_v52 = vpop.permute.xlu0 %315 }
 0x101   : > { %v265_v51 = vpop.permute.xlu1 %264  ;;  %v319_v7 = vrot.slane %v316_v52, 4 }
 0x102   : > { %v368_v59 = vpop.permute.xlu2 %367  ;;  %v268_v61 = vrot.slane %v265_v51, 4 }
 0x103   : > { %v370_v14 = vrot.slane %v368_v59, 4 }
 0x104   : > { %v271_v4 = vsel %vm270_vm0, %v268_v61, %v269_v62 }
 0x105   : > { %v273_v11 = vsel %vm272_vm1, %v265_v51, %v271_v4  ;;  %vm520_vm1 = vcmask 932864  }
 0x106   : > { %v276_v19 = vadd.f32 %v273_v11, %v250_v6 }
 0x109   : > { %v343_v54 = vpop.permute.xlu0 %342 }
 0x10a   : > { %v291_v55 = vpop.permute.xlu1 %290  ;;  %v416_v17 = vpop.permute.xlu2 %415  ;;  %v345_v20 = vrot.slane %v343_v54, 4 }
 0x10b   : > { %v294_v1 = vrot.slane %v291_v55, 4  ;;  %v419_v43 = vrot.slane %v416_v17, 4 }
 0x10c   : > { %v346_v26 = vsel %vm270_vm0, %v344_v24, %v345_v20 }
 0x10d   : > { %v296_v9 = vsel %vm270_vm0, %v294_v1, %v295_v2  ;;  %v348_v34 = vsel %vm347_vm4, %v341_v53, %v346_v26 }
 0x10e   : > { %v298_v18 = vsel %vm297_vm2, %v291_v55, %v296_v9  ;;  %vm523_vm2 = vcmask 1044352  }
 0x10f   : > { %v301_v25 = vadd.f32 %v298_v18, %v276_v19 }
 0x111   : > { %v391_v58 = vpop.permute.xlu0 %390 }
 0x112   : > { %v318_v60 = vpop.permute.xlu1 %317  ;;  %v394_v31 = vrot.slane %v391_v58, 4  ;;  %v443_v41 = vpop.permute.xlu2 %442 }
 0x113   : > { %v320_v5 = vrot.slane %v318_v60, 4  ;;  %v327_v10 = vadd.f32 %v318_v60, %v302_v3  ;;  %v445_v51 = vrot.slane %v443_v41, 4 }
 0x115   : > { %v321_v16 = vsel %vm270_vm0, %v319_v7, %v320_v5  ;;  %v352_v21 = vadd.f32 %v343_v54, %v327_v10 }
 0x116   : > { %v323_v23 = vsel %vm322_vm3, %v316_v52, %v321_v16  ;;  %v635_v16 = vld [vmem:[%s1175_s4] sm:$0xff]  ;;  %vm566_vm3 = vcmask 818176  }
 0x117   : > { %v326_v27 = vadd.f32 %v323_v23, %v301_v25  ;;  %v377_v29 = vadd.f32 %v368_v59, %v352_v21 }
 0x119   : > { %v418_v13 = vpop.permute.xlu0 %417  ;;  %v351_v38 = vadd.f32 %v348_v34, %v326_v27 }
 0x11a   : > { %v366_v15 = vpop.permute.xlu1 %365  ;;  %v420_v37 = vrot.slane %v418_v13, 4 }
 0x11b   : > { %v369_v22 = vrot.slane %v366_v15, 4 }
 0x11c   : > { %v421_v47 = vsel %vm270_vm0, %v419_v43, %v420_v37 }
 0x11d   : > { %v371_v28 = vsel %vm270_vm0, %v369_v22, %v370_v14  ;;  %v423_v54 = vsel %vm422_vm7, %v416_v17, %v421_v47 }
 0x11e   : > { %v373_v35 = vsel %vm372_vm5, %v366_v15, %v371_v28  ;;  %v577_v15 = vld [vmem:[%s1174_s3] sm:$0xff] }
 0x11f   : > { %v376_v44 = vadd.f32 %v373_v35, %v351_v38 }
 0x121   : > { %v457_v36 = vpop.permute.xlu0 %456 }
 0x122   : > { %v393_v30 = vpop.permute.xlu1 %392  ;;  %v461_v45 = vperm.slane %v457_v36, %v1065_v12 }
 0x123   : > { %v395_v32 = vrot.slane %v393_v30, 4  ;;  %v402_v33 = vadd.f32 %v393_v30, %v377_v29 }
 0x125   : > { %v396_v39 = vsel %vm270_vm0, %v394_v31, %v395_v32  ;;  %v427_v40 = vadd.f32 %v418_v13, %v402_v33 }
 0x126   : > { %v398_v42 = vsel %vm397_vm6, %v391_v58, %v396_v39 }
 0x127   : > { %v452_v46 = vadd.f32 %v443_v41, %v427_v40  ;;  %v401_v49 = vadd.f32 %v398_v42, %v376_v44 }
 0x129   : > { %v464_v48 = vadd.f32 %v461_v45, %v452_v46  ;;  %v426_v55 = vadd.f32 %v423_v54, %v401_v49 }
 0x12a   : > { %v441_v50 = vpop.permute.xlu1 %440 }
 0x12b   : > { %v466_v52 = vmax.f32 %v464_v48, 0.0  ;;  %v444_v53 = vrot.slane %v441_v50, 4 }
 0x12d   : > { %469 = vst.msk [vmem:[#allocation2 + $0x8] sm:$0xf] %vm468_vm8, %v466_v52  ;;  %v446_v56 = vsel %vm270_vm0, %v444_v53, %v445_v51  ;;  %vm513_vm0 = vcmask 913152  }
 0x12e   : > { %v448_v57 = vsel %vm447_vm9, %v441_v50, %v446_v56 }
 0x12f   : > { %v451_v58 = vadd.f32 %v448_v57, %v426_v55 }
 0x131   : > { %v463_v12 = vadd.f32 %v461_v45, %v451_v58 }
 0x133   : > { %v465_v59 = vmax.f32 %v463_v12, 0.0 }
 0x134   : > { %v570_v10 = vld [vmem:[#allocation2 + $0x8] sm:$0xf] }
 0x135   : > { %467 = vst [vmem:[#allocation2] sm:$0xff] %v465_v59 }
 0x13c   : > { %v525_v60 = vld [vmem:[#allocation2 + $0x4] sm:$0xf]  ;;  %v480_v61 = vld [vmem:[#allocation2] sm:$0xf] }
 0x13d   : > { %v473_v62 = vld [vmem:[#allocation2] sm:$0xf]  ;;  %527 = vrot.lane.b32.xlu0 %v525_v60, %s962_s9  ;;  %482 = vrot.lane.b32.xlu2 %v480_v61, %s963_s10  ;;  %v537_v2 = vld [vmem:[#allocation2 + $0x4] sm:$0xf]  ;;  %s230_s9 = sand.u32 1, %s933_s19  }
 0x13e   : > { %475 = vrot.lane.b32.xlu1 %v473_v62, %s956_s17  ;;  %v470_v63 = vld [vmem:[#allocation2] sm:$0xf]  ;;  %v531_v3 = vld [vmem:[#allocation2 + $0x4] sm:$0xf]  ;;  %s969_s17 = smov 104   ;;  %s741_s10 = sshll.u32 %s230_s9, 4 }
 0x13f   : > { %472 = vst.msk [vmem:[#allocation3] sm:$0xf] %vm471_vm10, %v470_v63  ;;  %v487_v1 = vld [vmem:[#allocation2] sm:$0xf]  ;;  %v561_v5 = vld [vmem:[#allocation2 + $0x4] sm:$0xff] }
 0x140   : > { %v494_v4 = vld [vmem:[#allocation2] sm:$0xf]  ;;  %v543_v6 = vld [vmem:[#allocation2 + $0x4] sm:$0xf] }
 0x141   : > { %v501_v7 = vld [vmem:[#allocation2] sm:$0xf]  ;;  %v549_v9 = vld [vmem:[#allocation2 + $0x4] sm:$0xf] }
 0x142   : > { %v508_v11 = vld [vmem:[#allocation2] sm:$0xf]  ;;  %v555_v13 = vld [vmem:[#allocation2 + $0x4] sm:$0xf] }
 0x145   : > { %489 = vrot.lane.b32.xlu0 %v487_v1, %s964_s11  ;;  %539 = vrot.lane.b32.xlu2 %v537_v2, %s959_s26  ;;  %s973_s26 = smov 102   ;;  %s748_s11 = sshll.u32 %s1025_s22, 4 }
 0x146   : > { %533 = vrot.lane.b32.xlu1 %v531_v3, %s955_s16  ;;  %s971_s16 = smov 98   ;;  %s648_s22 = scalar_lea.sflag [#allocation6], %s230_s9 }
 0x14d   : > { %496 = vrot.lane.b32.xlu0 %v494_v4, %s965_s12  ;;  %563 = vrot.lane.b32.xlu2 %v561_v5, %s966_s13 }
 0x14e   : > { %545 = vrot.lane.b32.xlu1 %v543_v6, %s967_s14  ;;  %s659_s14 = scalar_lea.hbm %s1176_s5, %s748_s11 }
 0x155   : > { %503 = vrot.lane.b32.xlu0 %v501_v7, %s968_s15  ;;  %551 = vrot.lane.b32.xlu2 %v549_v9, %s969_s17  ;;  %s232_s15 = scalar_lea.vmem [#allocation7], %s741_s10 }
 0x156   : > { %517 = vrot.lane.b32.xlu1 %v465_v59, %s970_s23  ;;  %s661_s17 = sshll.u32 %s232_s15, 4  ;;  %s663_s23 = sshll.u32 %s659_s14, 4  ;;  %s662_s17 = int_to_ptr.vmem [resolvable:$true] %s661_s17  ;;  %s664_s23 = int_to_ptr.hbm [resolvable:$true] %s663_s23 }
 0x15d   : > { %572 = vrot.lane.b32.xlu0 %v570_v10, %s971_s16  ;;  %510 = vrot.lane.b32.xlu2 %v508_v11, %s972_s25  ;;  %s889_s16 = sshra.s32 %s664_s23, 4  ;;  %s890_s16 = int_to_ptr.hbm [resolvable:$true] %s889_s16 }
 0x15e   : > { %557 = vrot.lane.b32.xlu1 %v555_v13, %s973_s26  ;;  %s891_s25 = scalar_lea.hbm %s890_s16, 16  ;;  %p896_p3 = scmp.lt.s32.totalorder %s890_s16, %s1176_s5 }
 0x15f   : > { %p892_p0 = scmp.ne.s32.totalorder %s890_s16, %s891_s25  ;;  %p897_p4 = scmp.lt.s32.totalorder %s895_s6, %s891_s25 }
 0x161   : > { %p893_p1 = pnand %p892_p0, %p1042_p5  ;;  %p898_p7 = por %p897_p4, %p896_p3 }
 0x163   : > { %p894_p2 = pneg %p893_p1 }
 0x165   : > { %613 = vperm.xlu0 %841, %v577_v15   ;;  %598 = vperm.xlu2 %840, %v577_v15   ;;  %p899_p8 = pnand %p898_p7, %p894_p2 }
 0x166   : > { %585 = vperm.xlu1 %839, %v577_v15  }
 0x16d   : > { %843 = vset.pattern.permute.xlu2 %v951_v8  ;;  %844 = vset.pattern.permute.xlu0 %v951_v8 }
 0x16e   : > { %842 = vset.pattern.permute.xlu1 %v944_v0  ;;  %638 = vperm.xlu2 %843, %v635_v16  }
 0x16f   : > { %628 = vperm.xlu1 %842, %v577_v15  }
 0x197   : > { %v483_v17 = vpop.permute.xlu2 %482 }
 0x19f   : > { %v540_v18 = vpop.permute.xlu2 %539 }
 0x1a7   : > { %v564_v21 = vpop.permute.xlu2 %563 }
 0x1a8   : > { %v565_v29 = vrot.slane %v564_v21, 4 }
 0x1aa   : > { %v567_v31 = vsel %vm566_vm3, %v564_v21, %v565_v29 }
 0x1af   : > { %v528_v19 = vpop.permute.xlu0 %527  ;;  %v552_v0 = vpop.permute.xlu2 %551 }
 0x1b0   : > { %530 = vst.msk [vmem:[#allocation3 + $0x4] sm:$0xf] %vm471_vm10, %v528_v19  ;;  %v476_v20 = vpop.permute.xlu1 %475 }
 0x1b1   : > { %479 = vst.msk [vmem:[#allocation3] sm:$0xf] %vm478_vm11, %v476_v20 }
 0x1b2   : > { %486 = vst.msk [vmem:[#allocation3] sm:$0xf] %vm485_vm12, %v483_v17 }
 0x1b7   : > { %v490_v22 = vpop.permute.xlu0 %489  ;;  %v511_v25 = vpop.permute.xlu2 %510 }
 0x1b8   : > { %493 = vst.msk [vmem:[#allocation3] sm:$0xf] %vm492_vm13, %v490_v22  ;;  %v534_v23 = vpop.permute.xlu1 %533 }
 0x1b9   : > { %536 = vst.msk [vmem:[#allocation3 + $0x4] sm:$0xf] %vm478_vm11, %v534_v23 }
 0x1ba   : > { %542 = vst.msk [vmem:[#allocation3 + $0x4] sm:$0xf] %vm485_vm12, %v540_v18 }
 0x1bf   : > { %v497_v8 = vpop.permute.xlu0 %496  ;;  %v599_v38 = vpop.permute.xlu2 %598 }
 0x1c0   : > { %500 = vst.msk [vmem:[#allocation3] sm:$0xf] %vm499_vm14, %v497_v8  ;;  %v546_v24 = vpop.permute.xlu1 %545 }
 0x1c1   : > { %548 = vst.msk [vmem:[#allocation3 + $0x4] sm:$0xf] %vm492_vm13, %v546_v24 }
 0x1c2   : > { %554 = vst.msk [vmem:[#allocation3 + $0x4] sm:$0xf] %vm499_vm14, %v552_v0 }
 0x1c7   : > { %v504_v14 = vpop.permute.xlu0 %503 }
 0x1c8   : > { %507 = vst.msk [vmem:[#allocation3] sm:$0xf] %vm506_vm15, %v504_v14  ;;  %v518_v26 = vpop.permute.xlu1 %517  ;;  %v639_v60 = vpop.permute.xlu2 %638 }
 0x1c9   : > { %514 = vst.msk [vmem:[#allocation3] sm:$0xf] %vm513_vm0, %v511_v25  ;;  %v519_v27 = vrot.slane %v518_v26, 4 }
 0x1cb   : > { %v521_v28 = vsel %vm520_vm1, %v518_v26, %v519_v27 }
 0x1cc   : > { %524 = vst.msk [vmem:[#allocation3] sm:$0xf] %vm523_vm2, %v521_v28 }
 0x1cf   : > { %v573_v32 = vpop.permute.xlu0 %572 }
 0x1d0   : > { %v558_v30 = vpop.permute.xlu1 %557 }
 0x1d1   : > { %560 = vst.msk [vmem:[#allocation3 + $0x4] sm:$0xf] %vm506_vm15, %v558_v30 }
 0x1d2   : > { %569 = vst.msk [vmem:[#allocation3 + $0x4] sm:$0xf] %vm513_vm0, %v567_v31 }
 0x1d3   : > { %575 = vst.msk [vmem:[#allocation3 + $0x4] sm:$0xf] %vm523_vm2, %v573_v32 }
 0x1d7   : > { %v614_v45 = vpop.permute.xlu0 %613 }
 0x1d8   : > { %v586_v33 = vpop.permute.xlu1 %585 }
 0x1da   : > { %v576_v34 = vld [vmem:[#allocation3] ss:$4 sm:$0x3]  ;;  %v606_v35 = vld [vmem:[#allocation3 + $0x2] ss:$4 sm:$0x3] }
 0x1db   : > { %v579_v36 = vperm.slane %v576_v34, 0  ;;  %v580_v37 = vperm.slane %v576_v34, 1  ;;  %v591_v39 = vld [vmem:[#allocation3 + $0x1] ss:$4 sm:$0x3]  ;;  %v608_v40 = vperm.slane %v606_v35, 0 }
 0x1dc   : > { %v609_v41 = vperm.slane %v606_v35, 1  ;;  %v621_v42 = vld [vmem:[#allocation3 + $0x3] ss:$4 sm:$0x3]  ;;  %v593_v46 = vperm.slane %v591_v39, 0  ;;  %v594_v47 = vperm.slane %v591_v39, 1 }
 0x1dd   : > { %v588_v43 = vmul.f32 %v586_v33, %v579_v36  ;;  %v589_v44 = vmul.f32 %v586_v33, %v580_v37  ;;  %v623_v50 = vperm.slane %v621_v42, 0  ;;  %v624_v51 = vperm.slane %v621_v42, 1 }
 0x1de   : > { %v601_v48 = vmul.f32 %v599_v38, %v593_v46  ;;  %v602_v49 = vmul.f32 %v599_v38, %v594_v47  ;;  %v616_v52 = vmul.f32 %v614_v45, %v608_v40  ;;  %v617_v53 = vmul.f32 %v614_v45, %v609_v41 }
 0x1e0   : > { %v603_v55 = vadd.f32 %v601_v48, %v588_v43  ;;  %v604_v56 = vadd.f32 %v602_v49, %v589_v44 }
 0x1e1   : > { %v629_v54 = vpop.permute.xlu1 %628 }
 0x1e2   : > { %v631_v57 = vmul.f32 %v629_v54, %v623_v50  ;;  %v632_v58 = vmul.f32 %v629_v54, %v624_v51  ;;  %v618_v12 = vadd.f32 %v616_v52, %v603_v55  ;;  %v619_v59 = vadd.f32 %v617_v53, %v604_v56 }
 0x1e4   : > { %v633_v61 = vadd.f32 %v631_v57, %v618_v12  ;;  %v634_v62 = vadd.f32 %v632_v58, %v619_v59 }
 0x1e6   : > { %v641_v63 = vadd.f32 %v639_v60, %v633_v61  ;;  %v642_v1 = vadd.f32 %v639_v60, %v634_v62 }
 0x1e8   : > { %v643_v2 = vmax.f32 %v641_v63, 0.0  ;;  %v644_v3 = vmax.f32 %v642_v1, 0.0 }
 0x1ea   : > { %645 = vst [vmem:[%s232_s15] sm:$0xff] %v643_v2 }
 0x1eb   : > { %646 = vst [vmem:[%s232_s15 + $0x8] sm:$0xff] %v644_v3 }
 0x1ec   : > { %902 = shalt.err (!%p899_p8)
}
 0x1ed   : > { %754 = dma.vmem_to_hbm [thread:$0]  (%p1042_p5), %s662_s17, 256, %s664_s23, %s648_s22  }
 0x1ee PF: > { %p766_p9 = scmp.ge.s32.totalorder %s941_s21, 2  ;;  %s675_s9 = sand.u32 1, %s929_s18  }
 0x1ef   : > { %s676_s10 = scalar_lea.sflag [#allocation6], %s675_s9 }
 0x1f0   : > { %p761_p10 = pnand %p766_p9, %p1046_p6 }
 0x1f2   : > { %p762_p11 = pneg %p761_p10 }
 0x1f4   : > { %924 = dma.done.wait (%p762_p11), %s676_s10, 256  }
 0x1f5   : > { %926 = vsyncadd (%p762_p11), %s676_s10, 4294967040  ;;  %p16_p12 = scmp.ge.s32.totalorder %s1029_s24, 4   ;;  %s1179_s18 = smov %s933_s19 }
 0x1f6   : > { %s1180_s19 = smov %s937_s20  ;;  %s1181_s20 = smov %s1040_s27 }
 0x1f7   : > { %s1182_s21 = smov %s1029_s24  ;;  %18 = sbr.rel (!%p16_p12) target bundleno = 4 (0x4), region = 83 }
 0x1fc   :  { %682 = vsyncpa [#allocation5], 1 }
 0x1fd   :  { %684 = vsyncpa [#allocation5 + $0x1], 1 }
 0x1fe   :  { %685 = vsyncpa [#allocation6], 1 }
 0x1ff   :  { %687 = vsyncpa [#allocation6 + $0x1], 1 }

</bundles_post_ra>
